<compile_context>
chip_gen: v6e
topology: v6e:2x2x1
jax: 0.10.0
libtpu: 0.0.40
codegen_flags: <defaults>
</compile_context>

<pallas_src>
import functools

import numpy as np
import jax
import jax.numpy as jnp
from jax.experimental import pallas as pl
from jax.experimental.pallas import tpu as pltpu


# ------------------------------- kernel -------------------------------------

def _dwt_kernel(st_ref, x_ref, o_ref, *, W, Wc, tg, fuse):
    # st_ref: fused   -> (Wc, 2*Wch) f32 constant [s | t]
    #         unfused -> (2, Wc, Wch) f32 constants (s, t)
    # x_ref : (4*tg, th, 2*W) -- row h of a channel is [x[2h, :] ++ x[2h+1, :]]
    # o_ref : (4, tg, th, Wh) -- filter-major output (LL, LH, HL, HH)
    Wch = Wc // 2
    n_chunks = W // Wc
    dot = functools.partial(jnp.dot,
                            preferred_element_type=jnp.float32,
                            precision=jax.lax.Precision.HIGHEST)
    out_dtype = o_ref.dtype

    if fuse:
        st_mat = st_ref[...]                       # (Wc, 2*Wch)
    else:
        s_mat = st_ref[0]                          # (Wc, Wch)
        t_mat = st_ref[1]                          # (Wc, Wch)

    for g in range(tg):                            # static unroll; tg <= 2
        # Channel-within-group reduction (taps are shared across the 4 channels
        # of a group), accumulated in f32 on the VPU.
        cs = (x_ref[4 * g + 0].astype(jnp.float32)
              + x_ref[4 * g + 1].astype(jnp.float32)
              + x_ref[4 * g + 2].astype(jnp.float32)
              + x_ref[4 * g + 3].astype(jnp.float32))      # (th, 2*W)
        r0 = cs[:, :W]                                     # rows 2h   (ki = 0)
        r1 = cs[:, W:]                                     # rows 2h+1 (ki = 1)
        a = r0 + r1                                        # low-pass along H
        d = r0 - r1                                        # high-pass along H

        for c in range(n_chunks):                  # block-diagonal W chunks
            if n_chunks == 1:
                ac, dc = a, d
            else:
                ac = a[:, c * Wc:(c + 1) * Wc]
                dc = d[:, c * Wc:(c + 1) * Wc]

            def store(f, val):
                if n_chunks == 1:
                    o_ref[f, g] = val.astype(out_dtype)
                else:  # 128-aligned static column slice (Wch % 128 == 0 here)
                    o_ref[f, g, :, c * Wch:(c + 1) * Wch] = val.astype(out_dtype)

            if fuse:
                ra = dot(ac, st_mat)               # (th, 2*Wch): [LL | HL]
                rd = dot(dc, st_mat)               # (th, 2*Wch): [LH | HH]
                store(0, ra[:, :Wch])              # LL
                store(2, ra[:, Wch:])              # HL
                store(1, rd[:, :Wch])              # LH
                store(3, rd[:, Wch:])              # HH
            else:
                store(0, dot(ac, s_mat))           # LL
                store(1, dot(dc, s_mat))           # LH
                store(2, dot(ac, t_mat))           # HL
                store(3, dot(dc, t_mat))           # HH


# ----------------------------- tiling helpers --------------------------------

def _pick_tile(n, max_tile, align=1):
    """Largest divisor of n that is <= max_tile and a multiple of `align`
    (falls back to n itself, which is always a legal full-dim block)."""
    best = None
    for d in range(1, n + 1):
        if n % d == 0 and d <= max_tile and d % align == 0:
            best = d
    return n if best is None else best


def _choose_tiles(groups, Hh, W, itemsize):
    """Pick (group tile, H tile) targeting ~8 MiB of input per grid step
    (double-buffered in+out+constants stay well under v7x's 64 MiB VMEM),
    growing the H tile first and keeping the group unroll at 1-2."""
    target_in_bytes = 8 * 1024 * 1024
    per_row_bytes = 4 * 2 * W * itemsize           # one group, one merged row
    align = max(8, 32 // itemsize)                 # sublane packing (f32:8, bf16:16)
    max_th = max(align, target_in_bytes // per_row_bytes)
    th = _pick_tile(Hh, max_th, align=align)
    tg = 1
    if th == Hh and groups % 2 == 0 and 2 * per_row_bytes * th <= target_in_bytes:
        tg = 2
    return tg, th


def _choose_w_chunk(W):
    """Cap the decimation-matmul K: for large W use block-diagonal chunks so
    FLOPs and constant bytes are O(W*Wc), not O(W^2)."""
    if W <= 512:
        return W
    for wc in (512, 256):
        if W % wc == 0:
            return wc
    return W                                        # odd large W: single chunk


def _decimation_matrices(Wc):
    """Haar W-direction stride-2 combine+decimate as (Wc, Wc//2) f32 matrices.
    s: 0.5*(even + odd) columns; t: 0.5*(even - odd) columns."""
    Wch = Wc // 2
    row = np.arange(Wc)[:, None]
    col = np.arange(Wch)[None, :]
    pair = (row // 2) == col
    even = (row % 2) == 0
    s = np.where(pair, 0.5, 0.0).astype(np.float32)
    t = np.where(pair, np.where(even, 0.5, -0.5), 0.0).astype(np.float32)
    return s, t


# ------------------------------- wrapper -------------------------------------

def dwt_2d(x, *, block_groups=None, block_h=None, w_chunk=None):
    N, C, H, W = x.shape
    assert C % 4 == 0 and H % 2 == 0 and W % 2 == 0
    groups = C // 4
    Hh, Wh = H // 2, W // 2

    Wc = _choose_w_chunk(W) if w_chunk is None else w_chunk
    assert W % Wc == 0 and Wc % 2 == 0
    Wch = Wc // 2
    fuse = (Wch % 128 == 0)                         # lane-aligned result slices

    tg_auto, th_auto = _choose_tiles(groups, Hh, W, x.dtype.itemsize)
    tg = tg_auto if block_groups is None else block_groups
    th = th_auto if block_h is None else block_h
    assert groups % tg == 0 and Hh % th == 0
    assert th % 8 == 0 or th == Hh                  # (8, 128) block-shape rule

    # Hoisted constants: block index never changes, so the pipeliner fetches
    # them into VMEM exactly once for the whole grid.
    s_np, t_np = _decimation_matrices(Wc)
    if fuse:
        const = jnp.asarray(np.concatenate([s_np, t_np], axis=1))   # (Wc, 2*Wch)
        const_spec = pl.BlockSpec((Wc, 2 * Wch), lambda n, g, h: (0, 0))
    else:
        const = jnp.asarray(np.stack([s_np, t_np]))                 # (2, Wc, Wch)
        const_spec = pl.BlockSpec((2, Wc, Wch), lambda n, g, h: (0, 0, 0))

    # Free reshape (no HBM copy): merge each pair of input rows into one
    # lane-dense row of width 2*W.
    xr = x.reshape(N, C, Hh, 2 * W)

    kernel = functools.partial(_dwt_kernel, W=W, Wc=Wc, tg=tg, fuse=fuse)
    out = pl.pallas_call(
        kernel,
        out_shape=jax.ShapeDtypeStruct((N, 4, groups, Hh, Wh), x.dtype),
        grid=(N, groups // tg, Hh // th),
        in_specs=[const_spec,
                  pl.BlockSpec((None, 4 * tg, th, 2 * W),
                               lambda n, g, h: (n, g, h, 0))],
        out_specs=pl.BlockSpec((None, 4, tg, th, Wh),
                               lambda n, g, h: (n, 0, g, h, 0)),
        compiler_params=pltpu.CompilerParams(
            dimension_semantics=("parallel", "parallel", "parallel"),
            vmem_limit_bytes=48 * 1024 * 1024),
    )(const, xr)

    # Free reshape: (N, 4, groups, Hh, Wh) -> (N, C, Hh, Wh) is exactly the
    # [LL | LH | HL | HH] channel ordering of torch.cat(..., dim=1).
    return out.reshape(N, C, Hh, Wh)


# ----------------------------- reference ------------------------------------

def _haar_filters():
    # pywt 'haar': dec_lo = [1/sqrt(2), 1/sqrt(2)], dec_hi = [-1/sqrt(2), 1/sqrt(2)]
    s = 1.0 / np.sqrt(2.0)
    dec_lo = np.array([s, s], dtype=np.float64)
    dec_hi = np.array([-s, s], dtype=np.float64)
    lo_r, hi_r = dec_lo[::-1], dec_hi[::-1]
    w_ll = np.outer(lo_r, lo_r)
    w_lh = np.outer(hi_r, lo_r)
    w_hl = np.outer(lo_r, hi_r)
    w_hh = np.outer(hi_r, hi_r)
    return np.stack([w_ll, w_lh, w_hl, w_hh]).astype(np.float32)  # (4, 2, 2)


def _reference(x):
    # Mirrors torch.nn.functional.conv2d(groups=C//4, stride=2) + cat(dim=1).
    N, C, H, W = x.shape
    groups = C // 4
    filt = _haar_filters()
    outs = []
    for f in range(4):
        w = jnp.broadcast_to(jnp.asarray(filt[f])[None, None], (groups, 4, 2, 2))
        outs.append(jax.lax.conv_general_dilated(
            x, w, window_strides=(2, 2), padding='VALID',
            dimension_numbers=('NCHW', 'OIHW', 'NCHW'),
            feature_group_count=groups,
            precision=jax.lax.Precision.HIGHEST))
    return jnp.concatenate(outs, axis=1)


if __name__ == "__main__":
    key = jax.random.PRNGKey(0)
    k1, k2, k3, k4 = jax.random.split(key, 4)

    # Small primary test (auto tiles; unfused small-W path; tg=2 unroll).
    x1 = jax.random.normal(k1, (2, 8, 16, 16), dtype=jnp.float32)
    y1 = jax.block_until_ready(dwt_2d(x1))
    r1 = jax.block_until_ready(_reference(x1))
    assert y1.shape == (2, 8, 8, 8), y1.shape
    np.testing.assert_allclose(np.asarray(y1), np.asarray(r1),
                               rtol=1e-4, atol=1e-5)

    # Exercise the multi-block grid path (tiles over groups and H).
    x2 = jax.random.normal(k2, (1, 16, 32, 32), dtype=jnp.float32)
    y2 = jax.block_until_ready(dwt_2d(x2, block_groups=1, block_h=8))
    r2 = jax.block_until_ready(_reference(x2))
    assert y2.shape == (1, 16, 16, 16), y2.shape
    np.testing.assert_allclose(np.asarray(y2), np.asarray(r2),
                               rtol=1e-4, atol=1e-5)

    # Lane-aligned Wh -> fused [s | t] decimation (two dots per group).
    x3 = jax.random.normal(k3, (1, 8, 16, 256), dtype=jnp.float32)
    y3 = jax.block_until_ready(dwt_2d(x3))
    r3 = jax.block_until_ready(_reference(x3))
    assert y3.shape == (1, 8, 8, 128), y3.shape
    np.testing.assert_allclose(np.asarray(y3), np.asarray(r3),
                               rtol=1e-4, atol=1e-5)

    # Large-W path: block-diagonal chunked decimation (Wc=512), sliced stores.
    x4 = jax.random.normal(k4, (1, 4, 8, 1024), dtype=jnp.float32)
    y4 = jax.block_until_ready(dwt_2d(x4))
    r4 = jax.block_until_ready(_reference(x4))
    assert y4.shape == (1, 4, 4, 512), y4.shape
    np.testing.assert_allclose(np.asarray(y4), np.asarray(r4),
                               rtol=1e-4, atol=1e-5)

    print("KERNEL_OK")
</pallas_src>

<mosaic_0001>
module attributes {stable_mosaic.version = 11 : i64} {
  func.func @_dwt_kernel(%arg0: i32, %arg1: i32, %arg2: i32, %arg3: memref<2x16x8xf32, #tpu.memory_space<vmem>>, %arg4: memref<1x8x8x32xf32, #tpu.memory_space<vmem>>, %arg5: memref<1x4x2x8x8xf32, #tpu.memory_space<vmem>>) attributes {dimension_semantics = [#tpu.dimension_semantics<parallel>, #tpu.dimension_semantics<parallel>, #tpu.dimension_semantics<parallel>], iteration_bounds = array<i64: 2, 1, 1>, scalar_prefetch = 0 : i64, scratch_operands = 0 : i64, tpu.core_type = #tpu.core_type<tc>, window_params = [{pipeline_mode = #tpu.pipeline_mode<synchronous>, transform_indices = @transform_0, window_bounds = array<i64: 2, 16, 8>}, {transform_indices = @transform_1, window_bounds = array<i64: 1, 8, 8, 32>}, {transform_indices = @transform_2, window_bounds = array<i64: 1, 4, 2, 8, 8>}]} {
    %c0 = arith.constant 0 : index
    %c0_0 = arith.constant 0 : index
    %c0_1 = arith.constant 0 : index
    %0 = vector.load %arg3[%c0, %c0_0, %c0_1] : memref<2x16x8xf32, #tpu.memory_space<vmem>>, vector<1x16x8xf32>
    %1 = vector.shape_cast %0 : vector<1x16x8xf32> to vector<16x8xf32>
    %c1 = arith.constant 1 : index
    %c0_2 = arith.constant 0 : index
    %c0_3 = arith.constant 0 : index
    %2 = vector.load %arg3[%c1, %c0_2, %c0_3] : memref<2x16x8xf32, #tpu.memory_space<vmem>>, vector<1x16x8xf32>
    %3 = vector.shape_cast %2 : vector<1x16x8xf32> to vector<16x8xf32>
    %c0_4 = arith.constant 0 : index
    %c0_5 = arith.constant 0 : index
    %c0_6 = arith.constant 0 : index
    %c0_7 = arith.constant 0 : index
    %4 = vector.load %arg4[%c0_4, %c0_5, %c0_6, %c0_7] : memref<1x8x8x32xf32, #tpu.memory_space<vmem>>, vector<1x1x8x32xf32>
    %5 = vector.shape_cast %4 : vector<1x1x8x32xf32> to vector<8x32xf32>
    %c0_8 = arith.constant 0 : index
    %c1_9 = arith.constant 1 : index
    %c0_10 = arith.constant 0 : index
    %c0_11 = arith.constant 0 : index
    %6 = vector.load %arg4[%c0_8, %c1_9, %c0_10, %c0_11] : memref<1x8x8x32xf32, #tpu.memory_space<vmem>>, vector<1x1x8x32xf32>
    %7 = vector.shape_cast %6 : vector<1x1x8x32xf32> to vector<8x32xf32>
    %8 = arith.addf %5, %7 : vector<8x32xf32>
    %c0_12 = arith.constant 0 : index
    %c2 = arith.constant 2 : index
    %c0_13 = arith.constant 0 : index
    %c0_14 = arith.constant 0 : index
    %9 = vector.load %arg4[%c0_12, %c2, %c0_13, %c0_14] : memref<1x8x8x32xf32, #tpu.memory_space<vmem>>, vector<1x1x8x32xf32>
    %10 = vector.shape_cast %9 : vector<1x1x8x32xf32> to vector<8x32xf32>
    %11 = arith.addf %8, %10 : vector<8x32xf32>
    %c0_15 = arith.constant 0 : index
    %c3 = arith.constant 3 : index
    %c0_16 = arith.constant 0 : index
    %c0_17 = arith.constant 0 : index
    %12 = vector.load %arg4[%c0_15, %c3, %c0_16, %c0_17] : memref<1x8x8x32xf32, #tpu.memory_space<vmem>>, vector<1x1x8x32xf32>
    %13 = vector.shape_cast %12 : vector<1x1x8x32xf32> to vector<8x32xf32>
    %14 = arith.addf %11, %13 : vector<8x32xf32>
    %15 = vector.extract_strided_slice %14 {offsets = [0, 0], sizes = [8, 16], strides = [1, 1]} : vector<8x32xf32> to vector<8x16xf32>
    %16 = vector.extract_strided_slice %14 {offsets = [0, 16], sizes = [8, 16], strides = [1, 1]} : vector<8x32xf32> to vector<8x16xf32>
    %17 = arith.addf %15, %16 : vector<8x16xf32>
    %18 = arith.subf %15, %16 : vector<8x16xf32>
    %cst = arith.constant dense<0.000000e+00> : vector<8x8xf32>
    %19 = tpu.matmul %17, %1, %cst {dimension_numbers = #tpu.dot_dimension_numbers<[1], [0], [0], [1], [0, 0, 1, 1], [], []>, precision = #tpu.contract_precision<fp32>} : vector<8x16xf32>, vector<16x8xf32>, vector<8x8xf32> -> vector<8x8xf32>
    %c0_18 = arith.constant 0 : index
    %c0_19 = arith.constant 0 : index
    %c0_20 = arith.constant 0 : index
    %c0_21 = arith.constant 0 : index
    %c0_22 = arith.constant 0 : index
    %20 = vector.load %arg5[%c0_18, %c0_19, %c0_20, %c0_21, %c0_22] : memref<1x4x2x8x8xf32, #tpu.memory_space<vmem>>, vector<1x1x1x8x8xf32>
    %21 = vector.shape_cast %20 : vector<1x1x1x8x8xf32> to vector<8x8xf32>
    %22 = vector.shape_cast %19 : vector<8x8xf32> to vector<1x1x1x8x8xf32>
    tpu.vector_store %arg5[%c0_18, %c0_19, %c0_20, %c0_21, %c0_22], %22 {strides = array<i32>} : memref<1x4x2x8x8xf32, #tpu.memory_space<vmem>>, vector<1x1x1x8x8xf32>,
    %cst_23 = arith.constant dense<0.000000e+00> : vector<8x8xf32>
    %23 = tpu.matmul %18, %1, %cst_23 {dimension_numbers = #tpu.dot_dimension_numbers<[1], [0], [0], [1], [0, 0, 1, 1], [], []>, precision = #tpu.contract_precision<fp32>} : vector<8x16xf32>, vector<16x8xf32>, vector<8x8xf32> -> vector<8x8xf32>
    %c0_24 = arith.constant 0 : index
    %c1_25 = arith.constant 1 : index
    %c0_26 = arith.constant 0 : index
    %c0_27 = arith.constant 0 : index
    %c0_28 = arith.constant 0 : index
    %24 = vector.load %arg5[%c0_24, %c1_25, %c0_26, %c0_27, %c0_28] : memref<1x4x2x8x8xf32, #tpu.memory_space<vmem>>, vector<1x1x1x8x8xf32>
    %25 = vector.shape_cast %24 : vector<1x1x1x8x8xf32> to vector<8x8xf32>
    %26 = vector.shape_cast %23 : vector<8x8xf32> to vector<1x1x1x8x8xf32>
    tpu.vector_store %arg5[%c0_24, %c1_25, %c0_26, %c0_27, %c0_28], %26 {strides = array<i32>} : memref<1x4x2x8x8xf32, #tpu.memory_space<vmem>>, vector<1x1x1x8x8xf32>,
    %cst_29 = arith.constant dense<0.000000e+00> : vector<8x8xf32>
    %27 = tpu.matmul %17, %3, %cst_29 {dimension_numbers = #tpu.dot_dimension_numbers<[1], [0], [0], [1], [0, 0, 1, 1], [], []>, precision = #tpu.contract_precision<fp32>} : vector<8x16xf32>, vector<16x8xf32>, vector<8x8xf32> -> vector<8x8xf32>
    %c0_30 = arith.constant 0 : index
    %c2_31 = arith.constant 2 : index
    %c0_32 = arith.constant 0 : index
    %c0_33 = arith.constant 0 : index
    %c0_34 = arith.constant 0 : index
    %28 = vector.load %arg5[%c0_30, %c2_31, %c0_32, %c0_33, %c0_34] : memref<1x4x2x8x8xf32, #tpu.memory_space<vmem>>, vector<1x1x1x8x8xf32>
    %29 = vector.shape_cast %28 : vector<1x1x1x8x8xf32> to vector<8x8xf32>
    %30 = vector.shape_cast %27 : vector<8x8xf32> to vector<1x1x1x8x8xf32>
    tpu.vector_store %arg5[%c0_30, %c2_31, %c0_32, %c0_33, %c0_34], %30 {strides = array<i32>} : memref<1x4x2x8x8xf32, #tpu.memory_space<vmem>>, vector<1x1x1x8x8xf32>,
    %cst_35 = arith.constant dense<0.000000e+00> : vector<8x8xf32>
    %31 = tpu.matmul %18, %3, %cst_35 {dimension_numbers = #tpu.dot_dimension_numbers<[1], [0], [0], [1], [0, 0, 1, 1], [], []>, precision = #tpu.contract_precision<fp32>} : vector<8x16xf32>, vector<16x8xf32>, vector<8x8xf32> -> vector<8x8xf32>
    %c0_36 = arith.constant 0 : index
    %c3_37 = arith.constant 3 : index
    %c0_38 = arith.constant 0 : index
    %c0_39 = arith.constant 0 : index
    %c0_40 = arith.constant 0 : index
    %32 = vector.load %arg5[%c0_36, %c3_37, %c0_38, %c0_39, %c0_40] : memref<1x4x2x8x8xf32, #tpu.memory_space<vmem>>, vector<1x1x1x8x8xf32>
    %33 = vector.shape_cast %32 : vector<1x1x1x8x8xf32> to vector<8x8xf32>
    %34 = vector.shape_cast %31 : vector<8x8xf32> to vector<1x1x1x8x8xf32>
    tpu.vector_store %arg5[%c0_36, %c3_37, %c0_38, %c0_39, %c0_40], %34 {strides = array<i32>} : memref<1x4x2x8x8xf32, #tpu.memory_space<vmem>>, vector<1x1x1x8x8xf32>,
    %c0_41 = arith.constant 0 : index
    %c4 = arith.constant 4 : index
    %c0_42 = arith.constant 0 : index
    %c0_43 = arith.constant 0 : index
    %35 = vector.load %arg4[%c0_41, %c4, %c0_42, %c0_43] : memref<1x8x8x32xf32, #tpu.memory_space<vmem>>, vector<1x1x8x32xf32>
    %36 = vector.shape_cast %35 : vector<1x1x8x32xf32> to vector<8x32xf32>
    %c0_44 = arith.constant 0 : index
    %c5 = arith.constant 5 : index
    %c0_45 = arith.constant 0 : index
    %c0_46 = arith.constant 0 : index
    %37 = vector.load %arg4[%c0_44, %c5, %c0_45, %c0_46] : memref<1x8x8x32xf32, #tpu.memory_space<vmem>>, vector<1x1x8x32xf32>
    %38 = vector.shape_cast %37 : vector<1x1x8x32xf32> to vector<8x32xf32>
    %39 = arith.addf %36, %38 : vector<8x32xf32>
    %c0_47 = arith.constant 0 : index
    %c6 = arith.constant 6 : index
    %c0_48 = arith.constant 0 : index
    %c0_49 = arith.constant 0 : index
    %40 = vector.load %arg4[%c0_47, %c6, %c0_48, %c0_49] : memref<1x8x8x32xf32, #tpu.memory_space<vmem>>, vector<1x1x8x32xf32>
    %41 = vector.shape_cast %40 : vector<1x1x8x32xf32> to vector<8x32xf32>
    %42 = arith.addf %39, %41 : vector<8x32xf32>
    %c0_50 = arith.constant 0 : index
    %c7 = arith.constant 7 : index
    %c0_51 = arith.constant 0 : index
    %c0_52 = arith.constant 0 : index
    %43 = vector.load %arg4[%c0_50, %c7, %c0_51, %c0_52] : memref<1x8x8x32xf32, #tpu.memory_space<vmem>>, vector<1x1x8x32xf32>
    %44 = vector.shape_cast %43 : vector<1x1x8x32xf32> to vector<8x32xf32>
    %45 = arith.addf %42, %44 : vector<8x32xf32>
    %46 = vector.extract_strided_slice %45 {offsets = [0, 0], sizes = [8, 16], strides = [1, 1]} : vector<8x32xf32> to vector<8x16xf32>
    %47 = vector.extract_strided_slice %45 {offsets = [0, 16], sizes = [8, 16], strides = [1, 1]} : vector<8x32xf32> to vector<8x16xf32>
    %48 = arith.addf %46, %47 : vector<8x16xf32>
    %49 = arith.subf %46, %47 : vector<8x16xf32>
    %cst_53 = arith.constant dense<0.000000e+00> : vector<8x8xf32>
    %50 = tpu.matmul %48, %1, %cst_53 {dimension_numbers = #tpu.dot_dimension_numbers<[1], [0], [0], [1], [0, 0, 1, 1], [], []>, precision = #tpu.contract_precision<fp32>} : vector<8x16xf32>, vector<16x8xf32>, vector<8x8xf32> -> vector<8x8xf32>
    %c0_54 = arith.constant 0 : index
    %c0_55 = arith.constant 0 : index
    %c1_56 = arith.constant 1 : index
    %c0_57 = arith.constant 0 : index
    %c0_58 = arith.constant 0 : index
    %51 = vector.load %arg5[%c0_54, %c0_55, %c1_56, %c0_57, %c0_58] : memref<1x4x2x8x8xf32, #tpu.memory_space<vmem>>, vector<1x1x1x8x8xf32>
    %52 = vector.shape_cast %51 : vector<1x1x1x8x8xf32> to vector<8x8xf32>
    %53 = vector.shape_cast %50 : vector<8x8xf32> to vector<1x1x1x8x8xf32>
    tpu.vector_store %arg5[%c0_54, %c0_55, %c1_56, %c0_57, %c0_58], %53 {strides = array<i32>} : memref<1x4x2x8x8xf32, #tpu.memory_space<vmem>>, vector<1x1x1x8x8xf32>,
    %cst_59 = arith.constant dense<0.000000e+00> : vector<8x8xf32>
    %54 = tpu.matmul %49, %1, %cst_59 {dimension_numbers = #tpu.dot_dimension_numbers<[1], [0], [0], [1], [0, 0, 1, 1], [], []>, precision = #tpu.contract_precision<fp32>} : vector<8x16xf32>, vector<16x8xf32>, vector<8x8xf32> -> vector<8x8xf32>
    %c0_60 = arith.constant 0 : index
    %c1_61 = arith.constant 1 : index
    %c1_62 = arith.constant 1 : index
    %c0_63 = arith.constant 0 : index
    %c0_64 = arith.constant 0 : index
    %55 = vector.load %arg5[%c0_60, %c1_61, %c1_62, %c0_63, %c0_64] : memref<1x4x2x8x8xf32, #tpu.memory_space<vmem>>, vector<1x1x1x8x8xf32>
    %56 = vector.shape_cast %55 : vector<1x1x1x8x8xf32> to vector<8x8xf32>
    %57 = vector.shape_cast %54 : vector<8x8xf32> to vector<1x1x1x8x8xf32>
    tpu.vector_store %arg5[%c0_60, %c1_61, %c1_62, %c0_63, %c0_64], %57 {strides = array<i32>} : memref<1x4x2x8x8xf32, #tpu.memory_space<vmem>>, vector<1x1x1x8x8xf32>,
    %cst_65 = arith.constant dense<0.000000e+00> : vector<8x8xf32>
    %58 = tpu.matmul %48, %3, %cst_65 {dimension_numbers = #tpu.dot_dimension_numbers<[1], [0], [0], [1], [0, 0, 1, 1], [], []>, precision = #tpu.contract_precision<fp32>} : vector<8x16xf32>, vector<16x8xf32>, vector<8x8xf32> -> vector<8x8xf32>
    %c0_66 = arith.constant 0 : index
    %c2_67 = arith.constant 2 : index
    %c1_68 = arith.constant 1 : index
    %c0_69 = arith.constant 0 : index
    %c0_70 = arith.constant 0 : index
    %59 = vector.load %arg5[%c0_66, %c2_67, %c1_68, %c0_69, %c0_70] : memref<1x4x2x8x8xf32, #tpu.memory_space<vmem>>, vector<1x1x1x8x8xf32>
    %60 = vector.shape_cast %59 : vector<1x1x1x8x8xf32> to vector<8x8xf32>
    %61 = vector.shape_cast %58 : vector<8x8xf32> to vector<1x1x1x8x8xf32>
    tpu.vector_store %arg5[%c0_66, %c2_67, %c1_68, %c0_69, %c0_70], %61 {strides = array<i32>} : memref<1x4x2x8x8xf32, #tpu.memory_space<vmem>>, vector<1x1x1x8x8xf32>,
    %cst_71 = arith.constant dense<0.000000e+00> : vector<8x8xf32>
    %62 = tpu.matmul %49, %3, %cst_71 {dimension_numbers = #tpu.dot_dimension_numbers<[1], [0], [0], [1], [0, 0, 1, 1], [], []>, precision = #tpu.contract_precision<fp32>} : vector<8x16xf32>, vector<16x8xf32>, vector<8x8xf32> -> vector<8x8xf32>
    %c0_72 = arith.constant 0 : index
    %c3_73 = arith.constant 3 : index
    %c1_74 = arith.constant 1 : index
    %c0_75 = arith.constant 0 : index
    %c0_76 = arith.constant 0 : index
    %63 = vector.load %arg5[%c0_72, %c3_73, %c1_74, %c0_75, %c0_76] : memref<1x4x2x8x8xf32, #tpu.memory_space<vmem>>, vector<1x1x1x8x8xf32>
    %64 = vector.shape_cast %63 : vector<1x1x1x8x8xf32> to vector<8x8xf32>
    %65 = vector.shape_cast %62 : vector<8x8xf32> to vector<1x1x1x8x8xf32>
    tpu.vector_store %arg5[%c0_72, %c3_73, %c1_74, %c0_75, %c0_76], %65 {strides = array<i32>} : memref<1x4x2x8x8xf32, #tpu.memory_space<vmem>>, vector<1x1x1x8x8xf32>,
    return
  }
  func.func @transform_0(%arg0: i32, %arg1: i32, %arg2: i32) -> (i32, i32, i32) {
    %c0_i32 = arith.constant 0 : i32
    %c0_i32_0 = arith.constant 0 : i32
    %c0_i32_1 = arith.constant 0 : i32
    %c0_i32_2 = arith.constant 0 : i32
    return %c0_i32, %c0_i32_0, %c0_i32_1 : i32, i32, i32
  }
  func.func @transform_1(%arg0: i32, %arg1: i32, %arg2: i32) -> (i32, i32, i32, i32) {
    %c0_i32 = arith.constant 0 : i32
    %c0_i32_0 = arith.constant 0 : i32
    return %arg0, %arg1, %arg2, %c0_i32 : i32, i32, i32, i32
  }
  func.func @transform_2(%arg0: i32, %arg1: i32, %arg2: i32) -> (i32, i32, i32, i32, i32) {
    %c0_i32 = arith.constant 0 : i32
    %c0_i32_0 = arith.constant 0 : i32
    %c0_i32_1 = arith.constant 0 : i32
    return %arg0, %c0_i32, %arg1, %arg2, %c0_i32_0 : i32, i32, i32, i32, i32
  }
}

</mosaic_0001>

<bundles_post_ra>
// kernel: tpu_custom_call.1
= control target key start
LH: loop header
LB: loop body
LE: loop exit
PB: predicated region body
PF: predicated region fallthrough
CT: control target
= control target key end

     0   :  { %7 = vsyncpa [#allocation3], 0  ;;  %s5380_s0 = inlined_call_operand.vmem [shape: f32[2,16,8], index: 0, kind: input, shape index: {}]   ;;  %s5381_s1 = inlined_call_operand.hbm [shape: f32[2,8,8,32], index: 1, kind: input, shape index: {}]   ;;  %s5382_s2 = inlined_call_operand.hbm [shape: f32[2,4,2,8,8], index: 2, kind: output, shape index: {}]  }
   0x1   :  { %9 = vsyncpa [#allocation3 + $0x1], 0 }
   0x2   :  { %10 = vsyncpa [#allocation4], 0 }
   0x3   :  { %12 = vsyncpa [#allocation4 + $0x1], 0  ;;  %s4758_s9 = smov 0   ;;  %s4760_s10 = smov 0  }
   0x4   :  { %s4762_s11 = smov 0   ;;  %s4764_s12 = smov 0  }
   0x5   :  { %s4766_s13 = smov 0   ;;  %s4768_s14 = smov 0  }
   0x6 LB: > { %s4042_s15 = sadd.s32 4294967295, %s4732_s14   ;;  %s4043_s16 = sadd.s32 4294967294, %s4732_s14   ;;  %s4732_s14 = sphi %s4768_s14, %s18_s14   ;;  %s4728_s13 = sphi %s4766_s13, %s5393_s13   ;;  %s4724_s12 = sphi %s4764_s12, %s5392_s12   ;;  %s4720_s11 = sphi %s4762_s11, %s5391_s11   ;;  %s4716_s10 = sphi %s4760_s10, %s5390_s10   ;;  %s4712_s9 = sphi %s4758_s9, %s5389_s9  }
   0x7   : > { %s37_s17 = sadd.s32 1, %s4728_s13  ;;  %s69_s18 = sadd.s32 1, %s4720_s11 }
   0x8   : > { %p39_p0 = scmp.ge.s32.totalorder %s37_s17, 2  ;;  %p76_p1 = scmp.ne.s32.totalorder %s4720_s11, %s4716_s10 }
   0x9   : > { %p77_p2 = scmp.eq.s32.totalorder %s4732_s14, 0  ;;  %p82_p3 = scmp.ne.s32.totalorder %s4716_s10, %s4712_s9 }
   0xa   : > { %s5395_s17 = smov (%p39_p0, %s37_s17), 0  ;;  %p83_p5 = scmp.eq.s32.totalorder %s4042_s15, 0 }
   0xb   : > { %p4799_p4 = por %p77_p2, %p76_p1  ;;  %s62_s20 = ssub.s32 %s4728_s13, %s5395_s17 }
   0xc   : > { %p110_p6 = scmp.eq.s32.totalorder %s4042_s15, 1  ;;  %p67_p7 = scmp.eq.s32.totalorder %s62_s20, 0 }
   0xd   : > { %p4805_p8 = por %p83_p5, %p82_p3  ;;  %p116_p10 = scmp.eq.s32.totalorder %s4043_s16, 1 }
   0xe   : > { %p4809_p9 = por %p110_p6, %p76_p1  ;;  %p4567_p13 = scmp.lt.s32.totalorder %s4732_s14, 2 }
   0xf   : > { %s4814_s23 = scalar_select %p67_p7, %s4720_s11, %s69_s18  }
  0x10   : > { %p4816_p11 = por %p116_p10, %p82_p3  ;;  %s139_s25 = sand.u32 1, %s4720_s11  }
  0x11   : > { %s4046_s26 = sshll.u32 %s139_s25, 6  ;;  %s4073_s27 = sshll.u32 %s4728_s13, 10 }
  0x12   : > { %s152_s30 = scalar_lea.hbm %s5381_s1, %s4073_s27  ;;  %s143_s3 = scalar_lea.vmem [#allocation2], %s4046_s26 }
  0x13   : > { %s153_s4 = sshll.u32 %s143_s3, 4  ;;  %p4829_p0 = pnand %p4567_p13, %p4799_p4  ;;  %s154_s4 = int_to_ptr.vmem [resolvable:$true] %s153_s4 }
  0x14   : > { %p4049_p1 = scmp.ge.s32.totalorder %s4732_s14, 1  ;;  %s140_s6 = scalar_lea.sflag [#allocation3], %s139_s25 }
  0x15   : > { %p4626_p2 = pneg %p4829_p0  ;;  %s4637_s7 = scalar_lea.vmem %s154_s4, 1024 }
  0x16   : > { %p4638_p3 = scmp.ne.s32.totalorder %s154_s4, %s4637_s7  ;;  %s4734_s8 = smov [#allocation2]  }
  0x17   : > { %s4642_s15 = sshll.u32 %s4734_s8, 4  ;;  %s4643_s15 = int_to_ptr.vmem [resolvable:$false] %s4642_s15 }
  0x18   : > { %p4640_p5 = pnand %p4638_p3, %p4626_p2  ;;  %s4644_s16 = scalar_lea.vmem %s4643_s15, 2048 }
  0x19   : > { %p4645_p7 = scmp.lt.s32.totalorder %s154_s4, %s4643_s15  ;;  %p4646_p10 = scmp.lt.s32.totalorder %s4644_s16, %s4637_s7 }
  0x1a   : > { %p4641_p6 = pneg %p4640_p5 }
  0x1b   : > { %p4647_p12 = por %p4646_p10, %p4645_p7 }
  0x1d   : > { %p4648_p4 = pnand %p4647_p12, %p4641_p6 }
  0x1f   : > { %4651 = shalt.err (!%p4648_p4)
}
  0x20   : > { %s4735_s18 = smov 128   ;;  %s4736_s19 = smov 8  }
  0x21   : > { %4562 = dma.hbm_to_vmem [thread:$0]  (!%p4829_p0), %s152_s30, 1024, %s154_s4, %s140_s6, %s4735_s18, %s4735_s18, %s4736_s19  }
  0x22   : > { %p161_p13 = scmp.lt.s32.totalorder %s4732_s14, 3 }
  0x24   : > { %p162_p2 = pnand %p4049_p1, %p161_p13 }
  0x25   : > { %s4842_s20 = sand.u32 (!%p162_p2), 1, %s4716_s10  }
  0x26   : > { %165 = sbr.rel (%p162_p2) target bundleno = 524 (0x20c), region = 28  ;;  %s4050_s25 = sshll.u32 (!%p162_p2), %s4842_s20, 6 }
  0x27   : > { %s168_s26 = scalar_lea.sflag (!%p162_p2), [#allocation3], %s4842_s20  ;;  %s171_s27 = scalar_lea.vmem (!%p162_p2), [#allocation2], %s4050_s25 }
  0x2b   : > { %4703 = dma.done.wait (%p4805_p8), %s168_s26, 1024  }
  0x2c   : > { %4705 = vsyncadd (%p4805_p8), %s168_s26, 4294966272  ;;  %v4737_v0 = vmov 0.0   ;;  %vm4738_vm0 = vmmov 0   ;;  %v199_v1 = vld [vmem:[%s171_s27] sm:$0xff]  ;;  %v4054_v2 = vld [vmem:[%s171_s27 + $0x8] sm:$0xff]  ;;  %s4739_s3 = smov 112  }
  0x2d   : > { %4226 = vmatprep.subr.mxu1 %v4737_v0  ;;  %4219 = vmatprep.subr.mxu0 %v4737_v0  ;;  %v4055_v3 = vld [vmem:[%s171_s27 + $0x10] sm:$0xff]  ;;  %v202_v4 = vadd.f32 %v4054_v2, %v199_v1  ;;  %v4060_v5 = vld [vmem:[%s171_s27 + $0x20] sm:$0xff]  ;;  %v4061_v6 = vld [vmem:[%s171_s27 + $0x28] sm:$0xff]  ;;  %vm215_vm1 = vcmask 130048   ;;  %vm678_vm2 = vcmask 64512   ;;  %s5307_s8 = scalar_lea.vmem [#allocation5], %s4050_s25 }
  0x2e   : > { %4230 = vmatprep.mubr.msk.f32.mxu1 %vm4738_vm0, %v4737_v0  ;;  %4223 = vmatprep.mubr.msk.f32.mxu0 %vm4738_vm0, %v4737_v0  ;;  %v4056_v7 = vld [vmem:[%s171_s27 + $0x18] sm:$0xff]  ;;  %v2070_v8 = vadd.f32 %v4061_v6, %v4060_v5  ;;  %v4062_v9 = vld [vmem:[%s171_s27 + $0x30] sm:$0xff]  ;;  %v195_v10 = vld [vmem:[%s5380_s0 + $0x8] sm:$0xff]  ;;  %s4074_s15 = sshll.u32 %s4724_s12, 10  ;;  %s3950_s16 = sshll.u32 %s5307_s8, 4  ;;  %s5330_s16 = int_to_ptr.vmem [resolvable:$true] %s3950_s16 }
  0x2f   : > { %v205_v11 = vadd.f32 %v4055_v3, %v202_v4  ;;  %v4861_v12 = vand.u32 4294901760, %v195_v10  ;;  %v194_v13 = vld [vmem:[%s5380_s0] sm:$0xff]  ;;  %v4063_v15 = vld [vmem:[%s171_s27 + $0x38] sm:$0xff]  ;;  %v4052_v40 = vld [vmem:[%s5380_s0 + $0x10] sm:$0xff]  ;;  %s5328_s25 = scalar_lea.hbm %s5382_s2, %s4074_s15  ;;  %s3934_s26 = scalar_lea.sflag [#allocation4], %s4842_s20 }
  0x30   : > { %v2073_v14 = vadd.f32 %v4062_v9, %v2070_v8  ;;  %v4866_v16 = vand.u32 4294901760, %v194_v13  ;;  %v4053_v36 = vld [vmem:[%s5380_s0 + $0x18] sm:$0xff]  ;;  %v4944_v41 = vand.u32 4294901760, %v4052_v40  ;;  %s4652_s27 = scalar_lea.vmem %s5330_s16, 1024  ;;  %s4740_s12 = smov [#allocation5]  }
  0x31   : > { %v208_v17 = vadd.f32 %v4056_v7, %v205_v11  ;;  %v4869_v18 = vsub.f32 %v195_v10, %v4861_v12  ;;  %4220 = vmatpush3.msra.mxu0 %v4861_v12  ;;  %v4933_v39 = vand.u32 4294901760, %v4053_v36  ;;  %p4653_p8 = scmp.ne.s32.totalorder %s5330_s16, %s4652_s27  ;;  %s4656_s21 = sshll.u32 %s4740_s12, 4  ;;  %s4657_s21 = int_to_ptr.vmem [resolvable:$false] %s4656_s21 }
  0x32   : > { %v4873_v19 = vsub.f32 %v194_v13, %v4866_v16  ;;  %4221 = vmatprep.subr.mxu0 %v4737_v0  ;;  %v4876_v20 = vadd.f32 %v4063_v15, %v2073_v14  ;;  %v4963_v44 = vsub.f32 %v4052_v40, %v4944_v41  ;;  %s4658_s28 = scalar_lea.vmem %s4657_s21, 2048  ;;  %p4659_p1 = scmp.lt.s32.totalorder %s5330_s16, %s4657_s21 }
  0x33   : > { %210 = vrot.lane.b32.xlu0 %v208_v17, %s4739_s3  ;;  %v4879_v21 = vand.u32 4294901760, %v4869_v18  ;;  %4222 = vmatpush3.msra.mxu0 %v4866_v16  ;;  %v4953_v43 = vsub.f32 %v4053_v36, %v4933_v39  ;;  %p4654_p12 = pnand %p4653_p8, %p4809_p9  ;;  %p4660_p3 = scmp.lt.s32.totalorder %s4658_s28, %s4652_s27 }
  0x34   : > { %v4883_v22 = vand.u32 4294901760, %v4873_v19  ;;  %4233 = vmatprep.subr.mxu0 %v4737_v0  ;;  %v4982_v47 = vand.u32 4294901760, %v4963_v44 }
  0x35   : > { %v328_v23 = vsub.f32 %v4869_v18, %v4879_v21  ;;  %v4971_v46 = vand.u32 4294901760, %v4953_v43  ;;  %p4655_p0 = pneg %p4654_p12  ;;  %p4661_p5 = por %p4660_p3, %p4659_p1 }
  0x36   : > { %v335_v24 = vsub.f32 %v4873_v19, %v4883_v22  ;;  %v1260_v50 = vsub.f32 %v4963_v44, %v4982_v47 }
  0x37   : > { %2078 = vrot.lane.b32.xlu0 %v4876_v20, %s4739_s3  ;;  %v4891_v25 = vand.u32 4294901760, %v328_v23  ;;  %v1253_v49 = vsub.f32 %v4953_v43, %v4971_v46  ;;  %p4662_p6 = pnand %p4661_p5, %p4655_p0 }
  0x38   : > { %v4893_v26 = vand.u32 4294901760, %v335_v24  ;;  %v5012_v53 = vand.u32 4294901760, %v1260_v50 }
  0x39   : > { %4227 = vmatpush3.msra.mxu1 %v4891_v25  ;;  %v5003_v52 = vand.u32 4294901760, %v1253_v49 }
  0x3a   : > { %4228 = vmatprep.subr.mxu1 %v4737_v0 }
  0x3b   : > { %4229 = vmatpush3.msra.mxu1 %v4893_v26 }
  0x3c   : > { %4240 = vmatprep.subr.mxu1 %v4737_v0 }
  0xa5   : > { %v211_v27 = vpop.permute.xlu0 %210 }
  0xa6   : > { %v213_v28 = vadd.f32 %v211_v27, %v208_v17  ;;  %v214_v32 = vsub.f32 %v208_v17, %v211_v27 }
  0xa8   : > { %v217_v29 = vsel %vm215_vm1, %v213_v28, 0  ;;  %v681_v35 = vsel %vm215_vm1, %v214_v32, 0 }
  0xa9   : > { %v4900_v30 = vand.u32 4294901760, %v217_v29  ;;  %v4929_v38 = vand.u32 4294901760, %v681_v35  ;;  %v2079_v54 = vpop.permute.xlu0 %2078 }
  0xaa   : > { %v2081_v55 = vadd.f32 %v2079_v54, %v4876_v20  ;;  %v2082_v60 = vsub.f32 %v4876_v20, %v2079_v54 }
  0xab   : > { %v4903_v31 = vsub.f32 %v217_v29, %v4900_v30  ;;  %4231 = vmatmul.mubr.f32.vlgmr.msra.gmra.mxu1 %v4900_v30  ;;  %v4947_v42 = vsub.f32 %v681_v35, %v4929_v38 }
  0xac   : > { %4241 = vmatpush3.msra.mxu1 %v4861_v12  ;;  %4244 = vmatprep.mubr.msk.f32.mxu1 %vm4738_vm0, %v4737_v0  ;;  %v2084_v56 = vsel %vm215_vm1, %v2081_v55, 0  ;;  %v2548_v62 = vsel %vm215_vm1, %v2082_v60, 0 }
  0xad   : > { %4242 = vmatprep.subr.mxu1 %v4737_v0  ;;  %v4911_v33 = vand.u32 4294901760, %v4903_v31  ;;  %v4968_v45 = vand.u32 4294901760, %v4947_v42  ;;  %v5096_v57 = vand.u32 4294901760, %v2084_v56  ;;  %v5152_v1 = vand.u32 4294901760, %v2548_v62 }
  0xae   : > { %4243 = vmatpush3.msra.mxu1 %v4866_v16 }
  0xaf   : > { %4245 = vmatmul.mubr.f32.vlgmr.msra.gmra.mxu1 %v4911_v33  ;;  %4254 = vmatprep.subr.mxu1 %v4737_v0  ;;  %v289_v34 = vsub.f32 %v4903_v31, %v4911_v33  ;;  %v753_v48 = vsub.f32 %v4947_v42, %v4968_v45  ;;  %v5107_v58 = vsub.f32 %v2084_v56, %v5096_v57 }
  0xb0   : > { %4255 = vmatpush3.msra.mxu1 %v4861_v12  ;;  %4258 = vmatprep.mubr.msk.f32.mxu1 %vm4738_vm0, %v4737_v0  ;;  %v5163_v2 = vsub.f32 %v2548_v62, %v5152_v1 }
  0xb1   : > { %4256 = vmatprep.subr.mxu1 %v4737_v0  ;;  %v4926_v37 = vand.u32 4294901760, %v289_v34  ;;  %v5001_v51 = vand.u32 4294901760, %v753_v48  ;;  %v5122_v59 = vand.u32 4294901760, %v5107_v58 }
  0xb2   : > { %4257 = vmatpush3.msra.mxu1 %v4866_v16  ;;  %v5178_v3 = vand.u32 4294901760, %v5163_v2 }
  0xb3   : > { %4224 = vmatmul.mubr.f32.vlgmr.msra.gmra.mxu0 %v4926_v37  ;;  %4259 = vmatmul.mubr.f32.vlgmr.msra.gmra.mxu1 %v4900_v30  ;;  %v2156_v61 = vsub.f32 %v5107_v58, %v5122_v59 }
  0xb4   : > { %4234 = vmatpush3.msra.mxu0 %v4869_v18  ;;  %4268 = vmatprep.subr.mxu1 %v4737_v0  ;;  %v2620_v4 = vsub.f32 %v5163_v2, %v5178_v3 }
  0xb5   : > { %4235 = vmatprep.subr.mxu0 %v4737_v0  ;;  %4269 = vmatpush3.msra.mxu1 %v4891_v25  ;;  %v5147_v63 = vand.u32 4294901760, %v2156_v61 }
  0xb6   : > { %4236 = vmatpush3.msra.mxu0 %v4873_v19  ;;  %4270 = vmatprep.subr.mxu1 %v4737_v0  ;;  %v5201_v5 = vand.u32 4294901760, %v2620_v4 }
  0xb7   : > { %4237 = vmatprep.mubr.msk.f32.mxu0 %vm4738_vm0, %v4737_v0  ;;  %4247 = vmatprep.subr.mxu0 %v4737_v0 }
  0xb8   : > { %4271 = vmatpush3.msra.mxu1 %v4893_v26  ;;  %4272 = vmatprep.mubr.msk.f32.mxu1 %vm4738_vm0, %v4737_v0 }
  0xb9   : > { %4238 = vmatmul.mubr.f32.vlgmr.msra.gmra.mxu0 %v4903_v31  ;;  %4273 = vmatmul.mubr.f32.vlgmr.msra.gmra.mxu1 %v4929_v38 }
  0xba   : > { %4248 = vmatpush3.msra.mxu0 %v4879_v21  ;;  %4282 = vmatprep.subr.mxu1 %v4737_v0 }
  0xbb   : > { %4249 = vmatprep.subr.mxu0 %v4737_v0  ;;  %4283 = vmatpush3.msra.mxu1 %v4861_v12 }
  0xbc   : > { %4250 = vmatpush3.msra.mxu0 %v4883_v22  ;;  %4284 = vmatprep.subr.mxu1 %v4737_v0 }
  0xbd   : > { %4251 = vmatprep.mubr.msk.f32.mxu0 %vm4738_vm0, %v4737_v0  ;;  %4261 = vmatprep.subr.mxu0 %v4737_v0 }
  0xbe   : > { %4285 = vmatpush3.msra.mxu1 %v4866_v16  ;;  %4286 = vmatprep.mubr.msk.f32.mxu1 %vm4738_vm0, %v4737_v0 }
  0xbf   : > { %4252 = vmatmul.mubr.f32.vlgmr.msra.gmra.mxu0 %v4900_v30  ;;  %4287 = vmatmul.mubr.f32.vlgmr.msra.gmra.mxu1 %v4968_v45 }
  0xc0   : > { %4262 = vmatpush3.msra.mxu0 %v4861_v12  ;;  %4296 = vmatprep.subr.mxu1 %v4737_v0 }
  0xc1   : > { %4263 = vmatprep.subr.mxu0 %v4737_v0  ;;  %4297 = vmatpush3.msra.mxu1 %v4861_v12 }
  0xc2   : > { %4264 = vmatpush3.msra.mxu0 %v4866_v16  ;;  %4298 = vmatprep.subr.mxu1 %v4737_v0 }
  0xc3   : > { %4265 = vmatprep.mubr.msk.f32.mxu0 %vm4738_vm0, %v4737_v0  ;;  %4275 = vmatprep.subr.mxu0 %v4737_v0 }
  0xc4   : > { %4299 = vmatpush3.msra.mxu1 %v4866_v16  ;;  %4300 = vmatprep.mubr.msk.f32.mxu1 %vm4738_vm0, %v4737_v0 }
  0xc5   : > { %4266 = vmatmul.mubr.f32.vlgmr.msra.gmra.mxu0 %v5001_v51  ;;  %4301 = vmatmul.mubr.f32.vlgmr.msra.gmra.mxu1 %v4929_v38 }
  0xc6   : > { %4276 = vmatpush3.msra.mxu0 %v4869_v18  ;;  %4310 = vmatprep.subr.mxu1 %v4737_v0 }
  0xc7   : > { %4277 = vmatprep.subr.mxu0 %v4737_v0  ;;  %4311 = vmatpush3.msra.mxu1 %v5003_v52 }
  0xc8   : > { %4278 = vmatpush3.msra.mxu0 %v4873_v19  ;;  %4312 = vmatprep.subr.mxu1 %v4737_v0 }
  0xc9   : > { %4279 = vmatprep.mubr.msk.f32.mxu0 %vm4738_vm0, %v4737_v0  ;;  %4289 = vmatprep.subr.mxu0 %v4737_v0 }
  0xca   : > { %4313 = vmatpush3.msra.mxu1 %v5012_v53  ;;  %4314 = vmatprep.mubr.msk.f32.mxu1 %vm4738_vm0, %v4737_v0 }
  0xcb   : > { %4280 = vmatmul.mubr.f32.vlgmr.msra.gmra.mxu0 %v4947_v42  ;;  %4315 = vmatmul.mubr.f32.vlgmr.msra.gmra.mxu1 %v4900_v30 }
  0xcc   : > { %4290 = vmatpush3.msra.mxu0 %v4879_v21  ;;  %4324 = vmatprep.subr.mxu1 %v4737_v0 }
  0xcd   : > { %4291 = vmatprep.subr.mxu0 %v4737_v0  ;;  %4325 = vmatpush3.msra.mxu1 %v4933_v39 }
  0xce   : > { %4292 = vmatpush3.msra.mxu0 %v4883_v22  ;;  %4326 = vmatprep.subr.mxu1 %v4737_v0 }
  0xcf   : > { %4293 = vmatprep.mubr.msk.f32.mxu0 %vm4738_vm0, %v4737_v0  ;;  %4303 = vmatprep.subr.mxu0 %v4737_v0 }
  0xd0   : > { %4327 = vmatpush3.msra.mxu1 %v4944_v41  ;;  %4328 = vmatprep.mubr.msk.f32.mxu1 %vm4738_vm0, %v4737_v0 }
  0xd1   : > { %4294 = vmatmul.mubr.f32.vlgmr.msra.gmra.mxu0 %v4929_v38  ;;  %4329 = vmatmul.mubr.f32.vlgmr.msra.gmra.mxu1 %v4911_v33 }
  0xd2   : > { %4304 = vmatpush3.msra.mxu0 %v4933_v39  ;;  %4338 = vmatprep.subr.mxu1 %v4737_v0 }
  0xd3   : > { %4305 = vmatprep.subr.mxu0 %v4737_v0  ;;  %4339 = vmatpush3.msra.mxu1 %v4933_v39 }
  0xd4   : > { %4306 = vmatpush3.msra.mxu0 %v4944_v41  ;;  %4340 = vmatprep.subr.mxu1 %v4737_v0 }
  0xd5   : > { %4307 = vmatprep.mubr.msk.f32.mxu0 %vm4738_vm0, %v4737_v0  ;;  %4317 = vmatprep.subr.mxu0 %v4737_v0 }
  0xd6   : > { %4341 = vmatpush3.msra.mxu1 %v4944_v41  ;;  %4342 = vmatprep.mubr.msk.f32.mxu1 %vm4738_vm0, %v4737_v0 }
  0xd7   : > { %4308 = vmatmul.mubr.f32.vlgmr.msra.gmra.mxu0 %v4926_v37  ;;  %4343 = vmatmul.mubr.f32.vlgmr.msra.gmra.mxu1 %v4900_v30 }
  0xd8   : > { %4318 = vmatpush3.msra.mxu0 %v4953_v43  ;;  %4352 = vmatprep.subr.mxu1 %v4737_v0 }
  0xd9   : > { %4319 = vmatprep.subr.mxu0 %v4737_v0  ;;  %4353 = vmatpush3.msra.mxu1 %v5003_v52 }
  0xda   : > { %4320 = vmatpush3.msra.mxu0 %v4963_v44  ;;  %4354 = vmatprep.subr.mxu1 %v4737_v0 }
  0xdb   : > { %4321 = vmatprep.mubr.msk.f32.mxu0 %vm4738_vm0, %v4737_v0  ;;  %4331 = vmatprep.subr.mxu0 %v4737_v0 }
  0xdc   : > { %4355 = vmatpush3.msra.mxu1 %v5012_v53  ;;  %4356 = vmatprep.mubr.msk.f32.mxu1 %vm4738_vm0, %v4737_v0 }
  0xdd   : > { %4322 = vmatmul.mubr.f32.vlgmr.msra.gmra.mxu0 %v4903_v31  ;;  %4357 = vmatmul.mubr.f32.vlgmr.msra.gmra.mxu1 %v4929_v38 }
  0xde   : > { %4332 = vmatpush3.msra.mxu0 %v4971_v46  ;;  %4366 = vmatprep.subr.mxu1 %v4737_v0 }
  0xdf   : > { %4333 = vmatprep.subr.mxu0 %v4737_v0  ;;  %4367 = vmatpush3.msra.mxu1 %v4933_v39 }
  0xe0   : > { %4334 = vmatpush3.msra.mxu0 %v4982_v47  ;;  %4368 = vmatprep.subr.mxu1 %v4737_v0 }
  0xe1   : > { %4335 = vmatprep.mubr.msk.f32.mxu0 %vm4738_vm0, %v4737_v0  ;;  %4345 = vmatprep.subr.mxu0 %v4737_v0 }
  0xe2   : > { %4369 = vmatpush3.msra.mxu1 %v4944_v41  ;;  %4370 = vmatprep.mubr.msk.f32.mxu1 %vm4738_vm0, %v4737_v0 }
  0xe3   : > { %4336 = vmatmul.mubr.f32.vlgmr.msra.gmra.mxu0 %v4900_v30  ;;  %4371 = vmatmul.mubr.f32.vlgmr.msra.gmra.mxu1 %v4968_v45 }
  0xe4   : > { %4346 = vmatpush3.msra.mxu0 %v4933_v39  ;;  %4380 = vmatprep.subr.mxu1 %v4737_v0 }
  0xe5   : > { %4347 = vmatprep.subr.mxu0 %v4737_v0  ;;  %4381 = vmatpush3.msra.mxu1 %v4933_v39 }
  0xe6   : > { %4348 = vmatpush3.msra.mxu0 %v4944_v41  ;;  %4382 = vmatprep.subr.mxu1 %v4737_v0 }
  0xe7   : > { %4349 = vmatprep.mubr.msk.f32.mxu0 %vm4738_vm0, %v4737_v0  ;;  %4359 = vmatprep.subr.mxu0 %v4737_v0 }
  0xe8   : > { %4383 = vmatpush3.msra.mxu1 %v4944_v41  ;;  %4384 = vmatprep.mubr.msk.f32.mxu1 %vm4738_vm0, %v4737_v0 }
  0xe9   : > { %4350 = vmatmul.mubr.f32.vlgmr.msra.gmra.mxu0 %v5001_v51  ;;  %4385 = vmatmul.mubr.f32.vlgmr.msra.gmra.mxu1 %v4929_v38 }
  0xea   : > { %4360 = vmatpush3.msra.mxu0 %v4953_v43  ;;  %4394 = vmatprep.subr.mxu1 %v4737_v0 }
  0xeb   : > { %4361 = vmatprep.subr.mxu0 %v4737_v0  ;;  %4395 = vmatpush3.msra.mxu1 %v4891_v25 }
  0xec   : > { %4362 = vmatpush3.msra.mxu0 %v4963_v44  ;;  %4396 = vmatprep.subr.mxu1 %v4737_v0 }
  0xed   : > { %4363 = vmatprep.mubr.msk.f32.mxu0 %vm4738_vm0, %v4737_v0  ;;  %4373 = vmatprep.subr.mxu0 %v4737_v0 }
  0xee   : > { %4397 = vmatpush3.msra.mxu1 %v4893_v26  ;;  %4398 = vmatprep.mubr.msk.f32.mxu1 %vm4738_vm0, %v4737_v0 }
  0xef   : > { %4364 = vmatmul.mubr.f32.vlgmr.msra.gmra.mxu0 %v4947_v42  ;;  %4399 = vmatmul.mubr.f32.vlgmr.msra.gmra.mxu1 %v5096_v57 }
  0xf0   : > { %4374 = vmatpush3.msra.mxu0 %v4971_v46  ;;  %4408 = vmatprep.subr.mxu1 %v4737_v0 }
  0xf1   : > { %4375 = vmatprep.subr.mxu0 %v4737_v0  ;;  %4409 = vmatpush3.msra.mxu1 %v4861_v12 }
  0xf2   : > { %4376 = vmatpush3.msra.mxu0 %v4982_v47  ;;  %4410 = vmatprep.subr.mxu1 %v4737_v0 }
  0xf3   : > { %4377 = vmatprep.mubr.msk.f32.mxu0 %vm4738_vm0, %v4737_v0  ;;  %4387 = vmatprep.subr.mxu0 %v4737_v0 }
  0xf4   : > { %4411 = vmatpush3.msra.mxu1 %v4866_v16  ;;  %4412 = vmatprep.mubr.msk.f32.mxu1 %vm4738_vm0, %v4737_v0 }
  0xf5   : > { %4378 = vmatmul.mubr.f32.vlgmr.msra.gmra.mxu0 %v4929_v38  ;;  %4413 = vmatmul.mubr.f32.vlgmr.msra.gmra.mxu1 %v5122_v59 }
  0xf6   : > { %4388 = vmatpush3.msra.mxu0 %v4861_v12  ;;  %4422 = vmatprep.subr.mxu1 %v4737_v0 }
  0xf7   : > { %4389 = vmatprep.subr.mxu0 %v4737_v0  ;;  %4423 = vmatpush3.msra.mxu1 %v4861_v12 }
  0xf8   : > { %4390 = vmatpush3.msra.mxu0 %v4866_v16  ;;  %4424 = vmatprep.subr.mxu1 %v4737_v0 }
  0xf9   : > { %4391 = vmatprep.mubr.msk.f32.mxu0 %vm4738_vm0, %v4737_v0  ;;  %4401 = vmatprep.subr.mxu0 %v4737_v0 }
  0xfa   : > { %4425 = vmatpush3.msra.mxu1 %v4866_v16  ;;  %4426 = vmatprep.mubr.msk.f32.mxu1 %vm4738_vm0, %v4737_v0 }
  0xfb   : > { %4392 = vmatmul.mubr.f32.vlgmr.msra.gmra.mxu0 %v5147_v63  ;;  %4427 = vmatmul.mubr.f32.vlgmr.msra.gmra.mxu1 %v5096_v57 }
  0xfc   : > { %4402 = vmatpush3.msra.mxu0 %v4869_v18  ;;  %4436 = vmatprep.subr.mxu1 %v4737_v0 }
  0xfd   : > { %4403 = vmatprep.subr.mxu0 %v4737_v0  ;;  %4437 = vmatpush3.msra.mxu1 %v4891_v25 }
  0xfe   : > { %4404 = vmatpush3.msra.mxu0 %v4873_v19  ;;  %4438 = vmatprep.subr.mxu1 %v4737_v0 }
  0xff   : > { %4405 = vmatprep.mubr.msk.f32.mxu0 %vm4738_vm0, %v4737_v0  ;;  %4415 = vmatprep.subr.mxu0 %v4737_v0 }
 0x100   : > { %4439 = vmatpush3.msra.mxu1 %v4893_v26  ;;  %4440 = vmatprep.mubr.msk.f32.mxu1 %vm4738_vm0, %v4737_v0 }
 0x101   : > { %4406 = vmatmul.mubr.f32.vlgmr.msra.gmra.mxu0 %v5107_v58  ;;  %4441 = vmatmul.mubr.f32.vlgmr.msra.gmra.mxu1 %v5152_v1 }
 0x102   : > { %4416 = vmatpush3.msra.mxu0 %v4879_v21  ;;  %4450 = vmatprep.subr.mxu1 %v4737_v0 }
 0x103   : > { %4417 = vmatprep.subr.mxu0 %v4737_v0  ;;  %4451 = vmatpush3.msra.mxu1 %v4861_v12 }
 0x104   : > { %4418 = vmatpush3.msra.mxu0 %v4883_v22  ;;  %4452 = vmatprep.subr.mxu1 %v4737_v0 }
 0x105   : > { %4419 = vmatprep.mubr.msk.f32.mxu0 %vm4738_vm0, %v4737_v0  ;;  %4429 = vmatprep.subr.mxu0 %v4737_v0 }
 0x106   : > { %4453 = vmatpush3.msra.mxu1 %v4866_v16  ;;  %4454 = vmatprep.mubr.msk.f32.mxu1 %vm4738_vm0, %v4737_v0 }
 0x107   : > { %4420 = vmatmul.mubr.f32.vlgmr.msra.gmra.mxu0 %v5096_v57  ;;  %4455 = vmatmul.mubr.f32.vlgmr.msra.gmra.mxu1 %v5178_v3 }
 0x108   : > { %4430 = vmatpush3.msra.mxu0 %v4861_v12  ;;  %4464 = vmatprep.subr.mxu1 %v4737_v0 }
 0x109   : > { %4431 = vmatprep.subr.mxu0 %v4737_v0  ;;  %4465 = vmatpush3.msra.mxu1 %v4861_v12 }
 0x10a   : > { %4432 = vmatpush3.msra.mxu0 %v4866_v16  ;;  %4466 = vmatprep.subr.mxu1 %v4737_v0 }
 0x10b   : > { %4433 = vmatprep.mubr.msk.f32.mxu0 %vm4738_vm0, %v4737_v0  ;;  %4443 = vmatprep.subr.mxu0 %v4737_v0 }
 0x10c   : > { %4467 = vmatpush3.msra.mxu1 %v4866_v16  ;;  %4468 = vmatprep.mubr.msk.f32.mxu1 %vm4738_vm0, %v4737_v0 }
 0x10d   : > { %4434 = vmatmul.mubr.f32.vlgmr.msra.gmra.mxu0 %v5201_v5  ;;  %4469 = vmatmul.mubr.f32.vlgmr.msra.gmra.mxu1 %v5152_v1 }
 0x10e   : > { %4444 = vmatpush3.msra.mxu0 %v4869_v18  ;;  %4478 = vmatprep.subr.mxu1 %v4737_v0 }
 0x10f   : > { %4445 = vmatprep.subr.mxu0 %v4737_v0  ;;  %4479 = vmatpush3.msra.mxu1 %v5003_v52 }
 0x110   : > { %4446 = vmatpush3.msra.mxu0 %v4873_v19  ;;  %4480 = vmatprep.subr.mxu1 %v4737_v0 }
 0x111   : > { %4447 = vmatprep.mubr.msk.f32.mxu0 %vm4738_vm0, %v4737_v0  ;;  %4457 = vmatprep.subr.mxu0 %v4737_v0 }
 0x112   : > { %4481 = vmatpush3.msra.mxu1 %v5012_v53  ;;  %4482 = vmatprep.mubr.msk.f32.mxu1 %vm4738_vm0, %v4737_v0 }
 0x113   : > { %4448 = vmatmul.mubr.f32.vlgmr.msra.gmra.mxu0 %v5163_v2  ;;  %4483 = vmatmul.mubr.f32.vlgmr.msra.gmra.mxu1 %v5096_v57 }
 0x114   : > { %4458 = vmatpush3.msra.mxu0 %v4879_v21  ;;  %4492 = vmatprep.subr.mxu1 %v4737_v0 }
 0x115   : > { %4459 = vmatprep.subr.mxu0 %v4737_v0  ;;  %4493 = vmatpush3.msra.mxu1 %v4933_v39 }
 0x116   : > { %4460 = vmatpush3.msra.mxu0 %v4883_v22  ;;  %4494 = vmatprep.subr.mxu1 %v4737_v0 }
 0x117   : > { %4461 = vmatprep.mubr.msk.f32.mxu0 %vm4738_vm0, %v4737_v0  ;;  %4471 = vmatprep.subr.mxu0 %v4737_v0 }
 0x118   : > { %4495 = vmatpush3.msra.mxu1 %v4944_v41  ;;  %4496 = vmatprep.mubr.msk.f32.mxu1 %vm4738_vm0, %v4737_v0 }
 0x119   : > { %4462 = vmatmul.mubr.f32.vlgmr.msra.gmra.mxu0 %v5152_v1  ;;  %4497 = vmatmul.mubr.f32.vlgmr.msra.gmra.mxu1 %v5122_v59 }
 0x11a   : > { %4472 = vmatpush3.msra.mxu0 %v4933_v39  ;;  %4506 = vmatprep.subr.mxu1 %v4737_v0 }
 0x11b   : > { %4473 = vmatprep.subr.mxu0 %v4737_v0  ;;  %4507 = vmatpush3.msra.mxu1 %v4933_v39 }
 0x11c   : > { %4474 = vmatpush3.msra.mxu0 %v4944_v41  ;;  %4508 = vmatprep.subr.mxu1 %v4737_v0 }
 0x11d   : > { %4475 = vmatprep.mubr.msk.f32.mxu0 %vm4738_vm0, %v4737_v0  ;;  %4485 = vmatprep.subr.mxu0 %v4737_v0 }
 0x11e   : > { %4509 = vmatpush3.msra.mxu1 %v4944_v41  ;;  %4510 = vmatprep.mubr.msk.f32.mxu1 %vm4738_vm0, %v4737_v0 }
 0x11f   : > { %4476 = vmatmul.mubr.f32.vlgmr.msra.gmra.mxu0 %v5147_v63  ;;  %4511 = vmatmul.mubr.f32.vlgmr.msra.gmra.mxu1 %v5096_v57 }
 0x120   : > { %4486 = vmatpush3.msra.mxu0 %v4953_v43  ;;  %4520 = vmatprep.subr.mxu1 %v4737_v0 }
 0x121   : > { %4487 = vmatprep.subr.mxu0 %v4737_v0  ;;  %4521 = vmatpush3.msra.mxu1 %v5003_v52 }
 0x122   : > { %4488 = vmatpush3.msra.mxu0 %v4963_v44  ;;  %4522 = vmatprep.subr.mxu1 %v4737_v0 }
 0x123   : > { %4489 = vmatprep.mubr.msk.f32.mxu0 %vm4738_vm0, %v4737_v0  ;;  %4499 = vmatprep.subr.mxu0 %v4737_v0 }
 0x124   : > { %4523 = vmatpush3.msra.mxu1 %v5012_v53  ;;  %4524 = vmatprep.mubr.msk.f32.mxu1 %vm4738_vm0, %v4737_v0 }
 0x125   : > { %4490 = vmatmul.mubr.f32.vlgmr.msra.gmra.mxu0 %v5107_v58  ;;  %4525 = vmatmul.mubr.f32.vlgmr.msra.gmra.mxu1 %v5152_v1 }
 0x126   : > { %4500 = vmatpush3.msra.mxu0 %v4971_v46  ;;  %4534 = vmatprep.subr.mxu1 %v4737_v0 }
 0x127   : > { %4501 = vmatprep.subr.mxu0 %v4737_v0  ;;  %4535 = vmatpush3.msra.mxu1 %v4933_v39 }
 0x128   : > { %4502 = vmatpush3.msra.mxu0 %v4982_v47  ;;  %4536 = vmatprep.subr.mxu1 %v4737_v0 }
 0x129   : > { %4503 = vmatprep.mubr.msk.f32.mxu0 %vm4738_vm0, %v4737_v0  ;;  %4513 = vmatprep.subr.mxu0 %v4737_v0 }
 0x12a   : > { %4537 = vmatpush3.msra.mxu1 %v4944_v41  ;;  %4538 = vmatprep.mubr.msk.f32.mxu1 %vm4738_vm0, %v4737_v0 }
 0x12b   : > { %4504 = vmatmul.mubr.f32.vlgmr.msra.gmra.mxu0 %v5096_v57  ;;  %4539 = vmatmul.mubr.f32.vlgmr.msra.gmra.mxu1 %v5178_v3 }
 0x12c   : > { %4514 = vmatpush3.msra.mxu0 %v4933_v39  ;;  %4548 = vmatprep.subr.mxu1 %v4737_v0 }
 0x12d   : > { %4515 = vmatprep.subr.mxu0 %v4737_v0  ;;  %4549 = vmatpush3.msra.mxu1 %v4933_v39 }
 0x12e   : > { %4516 = vmatpush3.msra.mxu0 %v4944_v41  ;;  %4550 = vmatprep.subr.mxu1 %v4737_v0 }
 0x12f   : > { %4517 = vmatprep.mubr.msk.f32.mxu0 %vm4738_vm0, %v4737_v0  ;;  %4527 = vmatprep.subr.mxu0 %v4737_v0 }
 0x130   : > { %4551 = vmatpush3.msra.mxu1 %v4944_v41  ;;  %4552 = vmatprep.mubr.msk.f32.mxu1 %vm4738_vm0, %v4737_v0 }
 0x131   : > { %4518 = vmatmul.mubr.f32.vlgmr.msra.gmra.mxu0 %v5201_v5  ;;  %4553 = vmatmul.mubr.f32.vlgmr.msra.gmra.mxu1 %v5152_v1 }
 0x132   : > { %4528 = vmatpush3.msra.mxu0 %v4953_v43  ;;  %4531 = vmatprep.mubr.msk.f32.mxu0 %vm4738_vm0, %v4737_v0 }
 0x133   : > { %4529 = vmatprep.subr.mxu0 %v4737_v0 }
 0x134   : > { %4530 = vmatpush3.msra.mxu0 %v4963_v44 }
 0x135   : > { %4541 = vmatprep.subr.mxu0 %v4737_v0  ;;  %4532 = vmatmul.mubr.f32.vlgmr.msra.gmra.mxu0 %v5163_v2 }
 0x136   : > { %4542 = vmatpush3.msra.mxu0 %v4971_v46  ;;  %4545 = vmatprep.mubr.msk.f32.mxu0 %vm4738_vm0, %v4737_v0 }
 0x137   : > { %4543 = vmatprep.subr.mxu0 %v4737_v0 }
 0x138   : > { %4544 = vmatpush3.msra.mxu0 %v4982_v47 }
 0x139   : > { %4546 = vmatmul.mubr.f32.vlgmr.msra.gmra.mxu0 %v5152_v1 }
 0x16b   : > { %v373_v6 = vpop.f32.mrf.mxu1 }
 0x16d   : > { %v4232_v7 = vpop.f32.mrf.mxu1 }
 0x16f   : > { %v524_v8 = vpop.f32.mrf.mxu1 }
 0x171   : > { %v4246_v9 = vpop.f32.mrf.mxu1 }
 0x173   : > { %v292_v10 = vpop.f32.mrf.mxu0  ;;  %v674_v11 = vpop.f32.mrf.mxu1 }
 0x174   : > { %v374_v14 = vadd.f32 %v373_v6, %v292_v10 }
 0x175   : > { %v4225_v12 = vpop.f32.mrf.mxu0  ;;  %v4260_v13 = vpop.f32.mrf.mxu1 }
 0x179   : > { %v449_v15 = vpop.f32.mrf.mxu0  ;;  %v837_v16 = vpop.f32.mrf.mxu1 }
 0x17a   : > { %v450_v17 = vadd.f32 %v449_v15, %v374_v14 }
 0x17b   : > { %v4239_v18 = vpop.f32.mrf.mxu0  ;;  %v4274_v19 = vpop.f32.mrf.mxu1 }
 0x17c   : > { %v525_v0 = vadd.f32 %v524_v8, %v450_v17 }
 0x17f   : > { %v601_v20 = vpop.f32.mrf.mxu0  ;;  %v988_v21 = vpop.f32.mrf.mxu1 }
 0x180   : > { %v602_v22 = vadd.f32 %v601_v20, %v525_v0 }
 0x181   : > { %v4253_v23 = vpop.f32.mrf.mxu0  ;;  %v4288_v24 = vpop.f32.mrf.mxu1 }
 0x182   : > { %v675_v25 = vadd.f32 %v674_v11, %v602_v22 }
 0x184   : > { %679 = vst.msk [vmem:[%s5307_s8] sm:$0xff] %vm678_vm2, %v675_v25 }
 0x185   : > { %v756_v26 = vpop.f32.mrf.mxu0  ;;  %v1138_v27 = vpop.f32.mrf.mxu1 }
 0x186   : > { %v838_v30 = vadd.f32 %v837_v16, %v756_v26 }
 0x187   : > { %v4267_v28 = vpop.f32.mrf.mxu0  ;;  %v4302_v29 = vpop.f32.mrf.mxu1 }
 0x18b   : > { %v913_v31 = vpop.f32.mrf.mxu0  ;;  %v1298_v32 = vpop.f32.mrf.mxu1 }
 0x18c   : > { %v914_v33 = vadd.f32 %v913_v31, %v838_v30 }
 0x18d   : > { %v4281_v34 = vpop.f32.mrf.mxu0  ;;  %v4316_v35 = vpop.f32.mrf.mxu1 }
 0x18e   : > { %v989_v36 = vadd.f32 %v988_v21, %v914_v33 }
 0x191   : > { %v1065_v37 = vpop.f32.mrf.mxu0  ;;  %v1449_v38 = vpop.f32.mrf.mxu1 }
 0x192   : > { %v1066_v39 = vadd.f32 %v1065_v37, %v989_v36 }
 0x193   : > { %v4295_v40 = vpop.f32.mrf.mxu0  ;;  %v4330_v41 = vpop.f32.mrf.mxu1 }
 0x194   : > { %v1139_v42 = vadd.f32 %v1138_v27, %v1066_v39 }
 0x196   : > { %4057 = vst.msk [vmem:[%s5307_s8 + $0x10] sm:$0xff] %vm678_vm2, %v1139_v42 }
 0x197   : > { %v1217_v43 = vpop.f32.mrf.mxu0  ;;  %v1599_v44 = vpop.f32.mrf.mxu1 }
 0x198   : > { %v1299_v47 = vadd.f32 %v1298_v32, %v1217_v43 }
 0x199   : > { %v4309_v45 = vpop.f32.mrf.mxu0  ;;  %v4344_v46 = vpop.f32.mrf.mxu1 }
 0x19d   : > { %v1374_v48 = vpop.f32.mrf.mxu0  ;;  %v1759_v49 = vpop.f32.mrf.mxu1 }
 0x19e   : > { %v1375_v50 = vadd.f32 %v1374_v48, %v1299_v47 }
 0x19f   : > { %v4323_v51 = vpop.f32.mrf.mxu0  ;;  %v4358_v52 = vpop.f32.mrf.mxu1 }
 0x1a0   : > { %v1450_v53 = vadd.f32 %v1449_v38, %v1375_v50 }
 0x1a3   : > { %v1526_v54 = vpop.f32.mrf.mxu0  ;;  %v1910_v55 = vpop.f32.mrf.mxu1 }
 0x1a4   : > { %v1527_v56 = vadd.f32 %v1526_v54, %v1450_v53 }
 0x1a5   : > { %v4337_v57 = vpop.f32.mrf.mxu0  ;;  %v4372_v58 = vpop.f32.mrf.mxu1 }
 0x1a6   : > { %v1600_v59 = vadd.f32 %v1599_v44, %v1527_v56 }
 0x1a8   : > { %4058 = vst.msk [vmem:[%s5307_s8 + $0x20] sm:$0xff] %vm678_vm2, %v1600_v59 }
 0x1a9   : > { %v1678_v60 = vpop.f32.mrf.mxu0  ;;  %v2060_v61 = vpop.f32.mrf.mxu1 }
 0x1aa   : > { %v1760_v1 = vadd.f32 %v1759_v49, %v1678_v60 }
 0x1ab   : > { %v4351_v62 = vpop.f32.mrf.mxu0  ;;  %v4386_v63 = vpop.f32.mrf.mxu1 }
 0x1af   : > { %v1835_v2 = vpop.f32.mrf.mxu0  ;;  %v2240_v3 = vpop.f32.mrf.mxu1 }
 0x1b0   : > { %v1836_v4 = vadd.f32 %v1835_v2, %v1760_v1 }
 0x1b1   : > { %v4365_v5 = vpop.f32.mrf.mxu0  ;;  %v4400_v6 = vpop.f32.mrf.mxu1 }
 0x1b2   : > { %v1911_v7 = vadd.f32 %v1910_v55, %v1836_v4 }
 0x1b5   : > { %v1987_v8 = vpop.f32.mrf.mxu0  ;;  %v2391_v9 = vpop.f32.mrf.mxu1 }
 0x1b6   : > { %v1988_v10 = vadd.f32 %v1987_v8, %v1911_v7 }
 0x1b7   : > { %v4379_v11 = vpop.f32.mrf.mxu0  ;;  %v4414_v12 = vpop.f32.mrf.mxu1 }
 0x1b8   : > { %v2061_v13 = vadd.f32 %v2060_v61, %v1988_v10 }
 0x1ba   : > { %4059 = vst.msk [vmem:[%s5307_s8 + $0x30] sm:$0xff] %vm678_vm2, %v2061_v13 }
 0x1bb   : > { %v2159_v14 = vpop.f32.mrf.mxu0  ;;  %v2541_v15 = vpop.f32.mrf.mxu1 }
 0x1bc   : > { %v2241_v18 = vadd.f32 %v2240_v3, %v2159_v14 }
 0x1bd   : > { %v4393_v16 = vpop.f32.mrf.mxu0  ;;  %v4428_v17 = vpop.f32.mrf.mxu1 }
 0x1c1   : > { %v2316_v19 = vpop.f32.mrf.mxu0  ;;  %v2704_v0 = vpop.f32.mrf.mxu1 }
 0x1c2   : > { %v2317_v20 = vadd.f32 %v2316_v19, %v2241_v18 }
 0x1c3   : > { %v4407_v21 = vpop.f32.mrf.mxu0  ;;  %v4442_v22 = vpop.f32.mrf.mxu1 }
 0x1c4   : > { %v2392_v23 = vadd.f32 %v2391_v9, %v2317_v20 }
 0x1c7   : > { %v2468_v24 = vpop.f32.mrf.mxu0  ;;  %v2855_v25 = vpop.f32.mrf.mxu1 }
 0x1c8   : > { %v2469_v26 = vadd.f32 %v2468_v24, %v2392_v23 }
 0x1c9   : > { %v4421_v27 = vpop.f32.mrf.mxu0  ;;  %v4456_v28 = vpop.f32.mrf.mxu1 }
 0x1ca   : > { %v2542_v29 = vadd.f32 %v2541_v15, %v2469_v26 }
 0x1cc   : > { %4064 = vst.msk [vmem:[%s5307_s8 + $0x8] sm:$0xff] %vm678_vm2, %v2542_v29 }
 0x1cd   : > { %v2623_v30 = vpop.f32.mrf.mxu0  ;;  %v3005_v31 = vpop.f32.mrf.mxu1 }
 0x1ce   : > { %v2705_v34 = vadd.f32 %v2704_v0, %v2623_v30 }
 0x1cf   : > { %v4435_v32 = vpop.f32.mrf.mxu0  ;;  %v4470_v33 = vpop.f32.mrf.mxu1 }
 0x1d3   : > { %v2780_v35 = vpop.f32.mrf.mxu0  ;;  %v3165_v36 = vpop.f32.mrf.mxu1 }
 0x1d4   : > { %v2781_v37 = vadd.f32 %v2780_v35, %v2705_v34 }
 0x1d5   : > { %v4449_v38 = vpop.f32.mrf.mxu0  ;;  %v4484_v39 = vpop.f32.mrf.mxu1 }
 0x1d6   : > { %v2856_v40 = vadd.f32 %v2855_v25, %v2781_v37 }
 0x1d9   : > { %v2932_v41 = vpop.f32.mrf.mxu0  ;;  %v3316_v42 = vpop.f32.mrf.mxu1 }
 0x1da   : > { %v2933_v43 = vadd.f32 %v2932_v41, %v2856_v40 }
 0x1db   : > { %v4463_v44 = vpop.f32.mrf.mxu0  ;;  %v4498_v45 = vpop.f32.mrf.mxu1 }
 0x1dc   : > { %v3006_v46 = vadd.f32 %v3005_v31, %v2933_v43 }
 0x1de   : > { %4065 = vst.msk [vmem:[%s5307_s8 + $0x18] sm:$0xff] %vm678_vm2, %v3006_v46 }
 0x1df   : > { %v3084_v47 = vpop.f32.mrf.mxu0  ;;  %v3466_v48 = vpop.f32.mrf.mxu1 }
 0x1e0   : > { %v3166_v51 = vadd.f32 %v3165_v36, %v3084_v47 }
 0x1e1   : > { %v4477_v49 = vpop.f32.mrf.mxu0  ;;  %v4512_v50 = vpop.f32.mrf.mxu1 }
 0x1e5   : > { %v3241_v52 = vpop.f32.mrf.mxu0  ;;  %v3626_v53 = vpop.f32.mrf.mxu1 }
 0x1e6   : > { %v3242_v54 = vadd.f32 %v3241_v52, %v3166_v51 }
 0x1e7   : > { %v4491_v55 = vpop.f32.mrf.mxu0  ;;  %v4526_v56 = vpop.f32.mrf.mxu1 }
 0x1e8   : > { %v3317_v57 = vadd.f32 %v3316_v42, %v3242_v54 }
 0x1eb   : > { %v3393_v58 = vpop.f32.mrf.mxu0  ;;  %v3777_v59 = vpop.f32.mrf.mxu1 }
 0x1ec   : > { %v3394_v60 = vadd.f32 %v3393_v58, %v3317_v57 }
 0x1ed   : > { %v4505_v61 = vpop.f32.mrf.mxu0  ;;  %v4540_v62 = vpop.f32.mrf.mxu1 }
 0x1ee   : > { %v3467_v63 = vadd.f32 %v3466_v48, %v3394_v60 }
 0x1f0   : > { %4066 = vst.msk [vmem:[%s5307_s8 + $0x28] sm:$0xff] %vm678_vm2, %v3467_v63 }
 0x1f1   : > { %v3545_v1 = vpop.f32.mrf.mxu0  ;;  %v3927_v2 = vpop.f32.mrf.mxu1 }
 0x1f2   : > { %v3627_v5 = vadd.f32 %v3626_v53, %v3545_v1 }
 0x1f3   : > { %v4519_v3 = vpop.f32.mrf.mxu0  ;;  %v4554_v4 = vpop.f32.mrf.mxu1 }
 0x1f5   : > { %v3702_v6 = vpop.f32.mrf.mxu0 }
 0x1f6   : > { %v3703_v7 = vadd.f32 %v3702_v6, %v3627_v5 }
 0x1f7   : > { %v4533_v8 = vpop.f32.mrf.mxu0 }
 0x1f8   : > { %v3778_v9 = vadd.f32 %v3777_v59, %v3703_v7 }
 0x1f9   : > { %v3854_v10 = vpop.f32.mrf.mxu0 }
 0x1fa   : > { %v3855_v11 = vadd.f32 %v3854_v10, %v3778_v9 }
 0x1fb   : > { %v4547_v12 = vpop.f32.mrf.mxu0 }
 0x1fc   : > { %v3928_v13 = vadd.f32 %v3927_v2, %v3855_v11 }
 0x1fe   : > { %4067 = vst.msk [vmem:[%s5307_s8 + $0x38] sm:$0xff] %vm678_vm2, %v3928_v13 }
 0x1ff   : > { %4665 = shalt.err (!%p4662_p6)
}
 0x200   : > { %s4666_s29 = scalar_lea.hbm %s5328_s25, 1024  ;;  %s4670_s4 = scalar_lea.hbm %s5382_s2, 2048 }
 0x201   : > { %p4667_p7 = scmp.ne.s32.totalorder %s5328_s25, %s4666_s29  ;;  %p4671_p13 = scmp.lt.s32.totalorder %s5328_s25, %s5382_s2 }
 0x202   : > { %p4672_p2 = scmp.lt.s32.totalorder %s4670_s4, %s4666_s29 }
 0x203   : > { %p4668_p10 = pnand %p4667_p7, %p4809_p9 }
 0x204   : > { %p4673_p8 = por %p4672_p2, %p4671_p13 }
 0x205   : > { %p4669_p4 = pneg %p4668_p10 }
 0x207   : > { %p4674_p12 = pnand %p4673_p8, %p4669_p4 }
 0x209   : > { %4677 = shalt.err (!%p4674_p12)
}
 0x20a   : > { %s4741_s7 = smov 128   ;;  %s4742_s8 = smov 8  }
 0x20b   : > { %4557 = dma.vmem_to_hbm [thread:$0]  (%p4809_p9), %s5330_s16, 1024, %s5328_s25, %s3934_s26, %s4741_s7, %s4741_s7, %s4742_s8  }
 0x20c PF: > { %s3965_s15 = sand.u32 1, %s4712_s9   ;;  %p5388_p0 = scmp.ge.s32.totalorder %s4732_s14, 2 }
 0x20d   : > { %s3966_s18 = scalar_lea.sflag [#allocation4], %s3965_s15 }
 0x20e   : > { %p4564_p1 = pnand %p5388_p0, %p4816_p11 }
 0x210   : > { %p4565_p3 = pneg %p4564_p1 }
 0x212   : > { %4707 = dma.done.wait (%p4565_p3), %s3966_s18, 1024  }
 0x213   : > { %4709 = vsyncadd (%p4565_p3), %s3966_s18, 4294966272  ;;  %s18_s14 = sadd.s32 1, %s4732_s14   ;;  %s5389_s9 = smov %s4716_s10 }
 0x214   : > { %p15_p5 = scmp.ge.s32.totalorder %s18_s14, 4   ;;  %s5390_s10 = smov %s4720_s11 }
 0x215   : > { %s5391_s11 = smov %s4814_s23  ;;  %s5392_s12 = smov %s4728_s13 }
 0x216   : > { %s5393_s13 = smov %s5395_s17  ;;  %17 = sbr.rel (!%p15_p5) target bundleno = 6 (0x6), region = 88 }
 0x21b   :  { %3971 = vsyncpa [#allocation3], 1 }
 0x21c   :  { %3973 = vsyncpa [#allocation3 + $0x1], 1 }
 0x21d   :  { %3974 = vsyncpa [#allocation4], 1 }
 0x21e   :  { %3976 = vsyncpa [#allocation4 + $0x1], 1 }

</bundles_post_ra>
